<compile_context>
chip_gen: v7x
topology: tpu7x:2x2x1
jax: 0.10.0
libtpu: 0.0.40
codegen_flags: <defaults>
</compile_context>

<pallas_src>
import functools

import jax
import jax.numpy as jnp
from jax.experimental import pallas as pl
from jax.experimental.pallas import tpu as pltpu


def _linear_kernel(x_ref, w_ref, b_ref, o_ref):
    # x_ref: (TB, K)   w_ref: (K, N)   b_ref: (1, N) f32   o_ref: (TB, N)
    acc = jnp.dot(x_ref[...], w_ref[...], preferred_element_type=jnp.float32)
    o_ref[...] = (acc + b_ref[...]).astype(o_ref.dtype)   # f32 epilogue (v5e-safe)


def _round_up(x, m):
    return ((x + m - 1) // m) * m


def _vmem_budget_bytes():
    """Generation-aware usable-VMEM budget (~3/4 of physical: ~48 MiB v7x, ~96 MiB v5e/v6e)."""
    cap = None
    try:
        cap = getattr(pltpu.get_tpu_info(), "vmem_capacity_bytes", None)
    except Exception:
        cap = None
    if not cap:
        cap = 64 * 1024 * 1024          # conservative fallback (v7x physical VMEM)
    return int(cap) * 3 // 4


def _pick_tile_batch(batch, k, n, x_bytes, out_bytes, budget, sublane):
    """Largest batch tile whose (lane/sublane-padded) VMEM footprint fits the budget."""
    lanes_k = _round_up(k, 128)
    lanes_n = _round_up(n, 128)
    # Weight + bias footprint; count 2 buffers in case single-buffering falls back.
    # (Weights larger than VMEM would need a K-reduction grid axis; irrelevant at these sizes.)
    resident = 2 * (_round_up(k, 8) * lanes_n * x_bytes + 8 * lanes_n * 4)
    per_row = 2 * lanes_k * x_bytes + 2 * lanes_n * out_bytes    # double-buffered x + out
    tb = max(sublane, (budget - resident) // per_row)
    tb = min(tb, 16384)                          # per-step overhead < ~2% beyond this
    tb = min(tb, _round_up(batch, sublane))      # never larger than the batch itself
    tb = max(sublane, (tb // sublane) * sublane)
    # Split into >=2 grid steps only when each half still has thousands of rows
    # (so v7x's two TensorCores can share the "parallel" batch axis profitably).
    if batch > 8192 and pl.cdiv(batch, tb) < 2:
        tb = max(sublane, _round_up(pl.cdiv(batch, 2), sublane))
    return tb


def _build_call(batch, k, n, tile_batch, x_dtype, out_dtype, vmem_limit, single_buffer_params):
    grid = (pl.cdiv(batch, tile_batch),)
    x_bytes = jnp.dtype(x_dtype).itemsize
    out_bytes = jnp.dtype(out_dtype).itemsize

    if single_buffer_params:
        # Constant index_map -> the params never change between steps; one buffer is enough.
        w_spec = pl.BlockSpec((k, n), lambda i: (0, 0), pipeline_mode=pl.Buffered(1))
        b_spec = pl.BlockSpec((1, n), lambda i: (0, 0), pipeline_mode=pl.Buffered(1))
    else:
        w_spec = pl.BlockSpec((k, n), lambda i: (0, 0))
        b_spec = pl.BlockSpec((1, n), lambda i: (0, 0))

    cost = pl.CostEstimate(
        flops=2 * batch * k * n,
        transcendentals=0,
        bytes_accessed=batch * k * x_bytes + k * n * x_bytes + batch * n * out_bytes + n * 4,
    )

    return pl.pallas_call(
        _linear_kernel,
        out_shape=jax.ShapeDtypeStruct((batch, n), out_dtype),
        grid_spec=pltpu.PrefetchScalarGridSpec(
            num_scalar_prefetch=0,
            grid=grid,
            in_specs=[
                pl.BlockSpec((tile_batch, k), lambda i: (i, 0)),   # streamed x tile
                w_spec,                                            # resident W^T (K, N)
                b_spec,                                            # resident bias row (1, N)
            ],
            out_specs=pl.BlockSpec((tile_batch, n), lambda i: (i, 0)),
        ),
        compiler_params=pltpu.CompilerParams(
            dimension_semantics=("parallel",),
            vmem_limit_bytes=vmem_limit,
        ),
        cost_estimate=cost,
    )


def prepare_params(weight, bias, param_dtype=None):
    """One-time parameter prep (hoisted out of the per-call hot path).

    weight: (num_classes, input_size)   -- PyTorch nn.Linear layout
    bias:   (num_classes,)
    Returns (weight_t, bias_row): (input_size, num_classes) and (1, num_classes) f32.
    """
    weight = jnp.asarray(weight)
    bias = jnp.asarray(bias)
    if param_dtype is None:
        param_dtype = weight.dtype
    w_t = weight.T.astype(param_dtype)                    # (K, N)
    b_row = bias.astype(jnp.float32).reshape(1, -1)       # (1, N), f32 epilogue
    return w_t, b_row


def logistic_regression_forward_prepared(x, weight_t, bias_row, *, tile_batch=None):
    """out = x @ weight_t + bias  with pre-transposed (K, N) weight / (1, N) bias."""
    B, K = x.shape
    K2, N = weight_t.shape
    assert K == K2, "input_size mismatch"
    out_dtype = x.dtype
    x_bytes = jnp.dtype(x.dtype).itemsize
    out_bytes = jnp.dtype(out_dtype).itemsize
    sublane = 8 * (4 // x_bytes)                # 8 for f32, 16 for bf16

    if weight_t.dtype != x.dtype:               # tiny (K, N) cast keeps MXU inputs uniform
        weight_t = weight_t.astype(x.dtype)

    budget = _vmem_budget_bytes()
    if tile_batch is None:
        tile_batch = _pick_tile_batch(B, K, N, x_bytes, out_bytes, budget, sublane)
    tile_batch = max(sublane, (tile_batch // sublane) * sublane)

    try:
        fn = _build_call(B, K, N, tile_batch, x.dtype, out_dtype, budget, True)
        return fn(x, weight_t, bias_row)
    except Exception:
        # pl.Buffered(1) not supported by this JAX version: fall back to default buffering.
        fn = _build_call(B, K, N, tile_batch, x.dtype, out_dtype, budget, False)
        return fn(x, weight_t, bias_row)


def logistic_regression_forward(x, weight, bias, *, tile_batch=None):
    """Convenience wrapper taking PyTorch-layout (N, K) weight.  For repeated calls prefer
    make_logistic_regression() so the transpose/reshape happens once, not per call."""
    w_t, b_row = prepare_params(weight, bias, param_dtype=x.dtype)
    return logistic_regression_forward_prepared(x, w_t, b_row, tile_batch=tile_batch)


def make_logistic_regression(weight, bias, param_dtype=None):
    """Prepare parameters once and return a forward(x) closure (hot-path friendly)."""
    w_t, b_row = prepare_params(weight, bias, param_dtype)
    return functools.partial(logistic_regression_forward_prepared,
                             weight_t=w_t, bias_row=b_row)


if __name__ == "__main__":
    # Small shapes consistent with the module: batch=16, input_size=32, num_classes=10.
    B, INPUT_SIZE, NUM_CLASSES = 16, 32, 10

    key = jax.random.PRNGKey(0)
    kx, kw, kb, kx2 = jax.random.split(key, 4)

    x = jax.random.normal(kx, (B, INPUT_SIZE), dtype=jnp.float32)

    # Deterministic init mirroring nn.Linear's U(-1/sqrt(fan_in), 1/sqrt(fan_in)).
    bound = 1.0 / jnp.sqrt(jnp.float32(INPUT_SIZE))
    weight = jax.random.uniform(
        kw, (NUM_CLASSES, INPUT_SIZE), jnp.float32, minval=-bound, maxval=bound)
    bias = jax.random.uniform(
        kb, (NUM_CLASSES,), jnp.float32, minval=-bound, maxval=bound)

    ref = x @ weight.T + bias

    # Hot-path style: params prepared once, reused across calls.
    forward = make_logistic_regression(weight, bias)
    out = jax.block_until_ready(forward(x))
    assert out.shape == (B, NUM_CLASSES)
    assert out.dtype == x.dtype
    assert jnp.allclose(out, ref, atol=1e-5, rtol=1e-5)

    # Ragged batch: exercises the cdiv grid + masked last block (no wrapper pad / slice).
    B2 = 50
    x2 = jax.random.normal(kx2, (B2, INPUT_SIZE), dtype=jnp.float32)
    ref2 = x2 @ weight.T + bias
    out2 = jax.block_until_ready(
        logistic_regression_forward(x2, weight, bias, tile_batch=16))
    assert out2.shape == (B2, NUM_CLASSES)
    assert jnp.allclose(out2, ref2, atol=1e-5, rtol=1e-5)

    # bf16 activations supplied by the caller (true 2x HBM saving); f32 MXU accumulation.
    forward_bf16 = make_logistic_regression(weight, bias, param_dtype=jnp.bfloat16)
    out_bf16 = jax.block_until_ready(forward_bf16(x.astype(jnp.bfloat16)))
    assert out_bf16.shape == (B, NUM_CLASSES)
    assert jnp.allclose(out_bf16.astype(jnp.float32), ref, atol=5e-2, rtol=5e-2)

    print("KERNEL_OK")
</pallas_src>

<mosaic_0001>
module attributes {stable_mosaic.version = 11 : i64} {
  func.func @_linear_kernel(%arg0: i32, %arg1: memref<16x32xf32, #tpu.memory_space<vmem>>, %arg2: memref<32x10xf32, #tpu.memory_space<vmem>>, %arg3: memref<1x10xf32, #tpu.memory_space<vmem>>, %arg4: memref<16x10xf32, #tpu.memory_space<vmem>>) attributes {dimension_semantics = [#tpu.dimension_semantics<parallel>], iteration_bounds = array<i64: 1>, scalar_prefetch = 0 : i64, scratch_operands = 0 : i64, tpu.core_type = #tpu.core_type<tc>, window_params = [{transform_indices = @transform_0, window_bounds = array<i64: 16, 32>}, {pipeline_mode = #tpu.pipeline_mode<synchronous>, transform_indices = @transform_1, window_bounds = array<i64: 32, 10>}, {pipeline_mode = #tpu.pipeline_mode<synchronous>, transform_indices = @transform_2, window_bounds = array<i64: 1, 10>}, {transform_indices = @transform_3, window_bounds = array<i64: 16, 10>}]} {
    %c0 = arith.constant 0 : index
    %c0_0 = arith.constant 0 : index
    %0 = vector.load %arg1[%c0, %c0_0] : memref<16x32xf32, #tpu.memory_space<vmem>>, vector<16x32xf32>
    %c0_1 = arith.constant 0 : index
    %c0_2 = arith.constant 0 : index
    %1 = vector.load %arg2[%c0_1, %c0_2] : memref<32x10xf32, #tpu.memory_space<vmem>>, vector<32x10xf32>
    %cst = arith.constant dense<0.000000e+00> : vector<16x10xf32>
    %2 = tpu.matmul %0, %1, %cst {dimension_numbers = #tpu.dot_dimension_numbers<[1], [0], [0], [1], [0, 0, 1, 1], [], []>} : vector<16x32xf32>, vector<32x10xf32>, vector<16x10xf32> -> vector<16x10xf32>
    %c0_3 = arith.constant 0 : index
    %c0_4 = arith.constant 0 : index
    %3 = vector.load %arg3[%c0_3, %c0_4] : memref<1x10xf32, #tpu.memory_space<vmem>>, vector<1x10xf32>
    %4 = vector.broadcast %3 : vector<1x10xf32> to vector<16x10xf32>
    %5 = arith.addf %2, %4 : vector<16x10xf32>
    %c0_5 = arith.constant 0 : index
    %c0_6 = arith.constant 0 : index
    %6 = vector.load %arg4[%c0_5, %c0_6] : memref<16x10xf32, #tpu.memory_space<vmem>>, vector<16x10xf32>
    tpu.vector_store %arg4[%c0_5, %c0_6], %5 {strides = array<i32>} : memref<16x10xf32, #tpu.memory_space<vmem>>, vector<16x10xf32>,
    return
  }
  func.func @transform_0(%arg0: i32) -> (i32, i32) {
    %c0_i32 = arith.constant 0 : i32
    %c0_i32_0 = arith.constant 0 : i32
    return %arg0, %c0_i32 : i32, i32
  }
  func.func @transform_1(%arg0: i32) -> (i32, i32) {
    %c0_i32 = arith.constant 0 : i32
    %c0_i32_0 = arith.constant 0 : i32
    %c0_i32_1 = arith.constant 0 : i32
    return %c0_i32, %c0_i32_0 : i32, i32
  }
  func.func @transform_2(%arg0: i32) -> (i32, i32) {
    %c0_i32 = arith.constant 0 : i32
    %c0_i32_0 = arith.constant 0 : i32
    %c0_i32_1 = arith.constant 0 : i32
    return %c0_i32, %c0_i32_0 : i32, i32
  }
  func.func @transform_3(%arg0: i32) -> (i32, i32) {
    %c0_i32 = arith.constant 0 : i32
    %c0_i32_0 = arith.constant 0 : i32
    return %arg0, %c0_i32 : i32, i32
  }
}

module attributes {stable_mosaic.version = 11 : i64} {
  func.func @_linear_kernel(%arg0: i32, %arg1: memref<16x32xf32, #tpu.memory_space<vmem>>, %arg2: memref<32x10xf32, #tpu.memory_space<vmem>>, %arg3: memref<1x10xf32, #tpu.memory_space<vmem>>, %arg4: memref<16x10xf32, #tpu.memory_space<vmem>>) attributes {dimension_semantics = [#tpu.dimension_semantics<parallel>], iteration_bounds = array<i64: 1>, scalar_prefetch = 0 : i64, scratch_operands = 0 : i64, tpu.core_type = #tpu.core_type<tc>, window_params = [{transform_indices = @transform_0, window_bounds = array<i64: 16, 32>}, {pipeline_mode = #tpu.pipeline_mode<synchronous>, transform_indices = @transform_1, window_bounds = array<i64: 32, 10>}, {pipeline_mode = #tpu.pipeline_mode<synchronous>, transform_indices = @transform_2, window_bounds = array<i64: 1, 10>}, {transform_indices = @transform_3, window_bounds = array<i64: 16, 10>}]} {
    %c0 = arith.constant 0 : index
    %c0_0 = arith.constant 0 : index
    %0 = vector.load %arg1[%c0, %c0_0] : memref<16x32xf32, #tpu.memory_space<vmem>>, vector<16x32xf32>
    %c0_1 = arith.constant 0 : index
    %c0_2 = arith.constant 0 : index
    %1 = vector.load %arg2[%c0_1, %c0_2] : memref<32x10xf32, #tpu.memory_space<vmem>>, vector<32x10xf32>
    %cst = arith.constant dense<0.000000e+00> : vector<16x10xf32>
    %2 = tpu.matmul %0, %1, %cst {dimension_numbers = #tpu.dot_dimension_numbers<[1], [0], [0], [1], [0, 0, 1, 1], [], []>} : vector<16x32xf32>, vector<32x10xf32>, vector<16x10xf32> -> vector<16x10xf32>
    %c0_3 = arith.constant 0 : index
    %c0_4 = arith.constant 0 : index
    %3 = vector.load %arg3[%c0_3, %c0_4] : memref<1x10xf32, #tpu.memory_space<vmem>>, vector<1x10xf32>
    %4 = vector.broadcast %3 : vector<1x10xf32> to vector<16x10xf32>
    %5 = arith.addf %2, %4 : vector<16x10xf32>
    %c0_5 = arith.constant 0 : index
    %c0_6 = arith.constant 0 : index
    %6 = vector.load %arg4[%c0_5, %c0_6] : memref<16x10xf32, #tpu.memory_space<vmem>>, vector<16x10xf32>
    tpu.vector_store %arg4[%c0_5, %c0_6], %5 {strides = array<i32>} : memref<16x10xf32, #tpu.memory_space<vmem>>, vector<16x10xf32>,
    return
  }
  func.func @transform_0(%arg0: i32) -> (i32, i32) {
    %c0_i32 = arith.constant 0 : i32
    %c0_i32_0 = arith.constant 0 : i32
    return %arg0, %c0_i32 : i32, i32
  }
  func.func @transform_1(%arg0: i32) -> (i32, i32) {
    %c0_i32 = arith.constant 0 : i32
    %c0_i32_0 = arith.constant 0 : i32
    %c0_i32_1 = arith.constant 0 : i32
    return %c0_i32, %c0_i32_0 : i32, i32
  }
  func.func @transform_2(%arg0: i32) -> (i32, i32) {
    %c0_i32 = arith.constant 0 : i32
    %c0_i32_0 = arith.constant 0 : i32
    %c0_i32_1 = arith.constant 0 : i32
    return %c0_i32, %c0_i32_0 : i32, i32
  }
  func.func @transform_3(%arg0: i32) -> (i32, i32) {
    %c0_i32 = arith.constant 0 : i32
    %c0_i32_0 = arith.constant 0 : i32
    return %arg0, %c0_i32 : i32, i32
  }
}

</mosaic_0001>

<bundles_post_ra>
// kernel: tpu_custom_call.1
= control target key start
LH: loop header
LB: loop body
LE: loop exit
PB: predicated region body
PF: predicated region fallthrough
CT: control target
= control target key end

     0   :  { %vm28_vm0 = vcmask 261120   ;;  %s240_s0 = inlined_call_operand.vmem [shape: f32[16,32], index: 0, kind: input, shape index: {}]   ;;  %s241_s1 = inlined_call_operand.vmem [shape: f32[32,10], index: 1, kind: input, shape index: {}]   ;;  %s242_s2 = inlined_call_operand.vmem [shape: f32[1,10], index: 2, kind: input, shape index: {}]   ;;  %s243_s3 = inlined_call_operand.hbm [shape: f32[16,10], index: 3, kind: output, shape index: {}]  }
   0x1   :  { %v17_v0 = vld [vmem:[%s241_s1] sm:$0xff]  ;;  %v18_v1 = vld [vmem:[%s241_s1 + $0x8] sm:$0xff]  ;;  %v19_v2 = vld [vmem:[%s241_s1 + $0x10] sm:$0xff] }
   0x2   :  { %v149_v3 = vpack.c.bf16 %v18_v1, %v17_v0  ;;  %v20_v4 = vld [vmem:[%s241_s1 + $0x18] sm:$0xff]  ;;  %v15_v5 = vld [vmem:[%s240_s0] sm:$0xff] }
   0x3   :  { %v153_v6 = vpack.c.bf16 %v20_v4, %v19_v2  ;;  %146 = vmatprep.mubr.msk.f32.mxu0 %vm28_vm0, %v15_v5 }
   0x4   :  { %8 = vsyncpa [#allocation3], 0  ;;  %150 = vmatprep.subr.bf16.mxu0 %v149_v3  ;;  %v16_v7 = vld [vmem:[%s240_s0 + $0x8] sm:$0xff]  ;;  %v129_v8 = vld [vmem:[%s242_s2] ss:$0 sm:$0xff]  ;;  %s184_s1 = smov [#allocation2]  }
   0x5   :  { %152 = vmatpush3.bf16.msra.mxu0 %v149_v3  ;;  %s118_s26 = sshll.u32 %s184_s1, 4  ;;  %vm110_vm1 = vcmask 80896   ;;  %s119_s26 = int_to_ptr.vmem [resolvable:$true] %s118_s26 }
   0x6   :  { %154 = vmatprep.subr.bf16.mxu0 %v153_v6  ;;  %s160_s27 = scalar_lea.vmem %s119_s26, 256  ;;  %p165_p1 = scmp.lt.s32.totalorder %s119_s26, %s119_s26 }
   0x7   :  { %p161_p0 = scmp.ne.s32.totalorder %s119_s26, %s160_s27  ;;  %p166_p2 = scmp.lt.s32.totalorder %s160_s27, %s160_s27 }
   0x9   :  { %156 = vmatpush3.bf16.msra.mxu0 %v153_v6  ;;  %p167_p3 = por %p166_p2, %p165_p1 }
   0xb   :  { %p168_p4 = pnand %p167_p3, %p161_p0 }
   0xc   :  { %147 = vmatmul.mubr.msk.f32.vlgmr.msra.gmra.mrb[0].mxu0 %vm28_vm0, %v16_v7 }
  0xdf   :  { %v148_v9 = vpop.f32.mrb[0].mxu0 }
  0xe0   :  { %v107_v10 = vadd.f32 %v148_v9, %v129_v8  ;;  %v101_v11 = vpop.f32.mrb[1].mxu0 }
  0xe1   :  { %v102_v12 = vadd.f32 %v129_v8, %v101_v11 }
  0xe2   :  { %112 = vst.msk [vmem:[#allocation2 + $0x8] sm:$0xff] %vm110_vm1, %v107_v10 }
  0xe3   :  { %111 = vst.msk [vmem:[#allocation2] sm:$0xff] %vm110_vm1, %v102_v12 }
  0xe4   :  { %171 = shalt.err (!%p168_p4)
}
  0xe5   :  { %s172_s2 = scalar_lea.hbm %s243_s3, 256 }
  0xe6   :  { %p173_p5 = scmp.ne.s32.totalorder %s243_s3, %s172_s2  ;;  %p176_p6 = scmp.lt.u32.totalorder %s172_s2, %s243_s3 }
  0xe8   :  { %p178_p7 = pnand %p176_p6, %p173_p5 }
  0xea   :  { %181 = shalt.err (!%p178_p7)
}
  0xeb   :  { %s185_s6 = smov 128   ;;  %s186_s7 = smov 8  }
  0xec   :  { %124 = dma.vmem_to_hbm [thread:$0]  %s119_s26, 256, %s243_s3, [#allocation3], %s185_s6, %s185_s6, %s186_s7  }
  0xed   :  { %182 = dma.done.wait [#allocation3], 256  }
  0xee   :  { %183 = vsyncadd [#allocation3], 4294967040 }
  0xef   :  { %128 = vsyncpa [#allocation3], 1 }

// kernel: tpu_custom_call.1
= control target key start
LH: loop header
LB: loop body
LE: loop exit
PB: predicated region body
PF: predicated region fallthrough
CT: control target
= control target key end

     0   :  { %vm28_vm0 = vcmask 261120   ;;  %s240_s0 = inlined_call_operand.vmem [shape: f32[16,32], index: 0, kind: input, shape index: {}]   ;;  %s241_s1 = inlined_call_operand.vmem [shape: f32[32,10], index: 1, kind: input, shape index: {}]   ;;  %s242_s2 = inlined_call_operand.vmem [shape: f32[1,10], index: 2, kind: input, shape index: {}]   ;;  %s243_s3 = inlined_call_operand.hbm [shape: f32[16,10], index: 3, kind: output, shape index: {}]  }
   0x1   :  { %v17_v0 = vld [vmem:[%s241_s1] sm:$0xff]  ;;  %v18_v1 = vld [vmem:[%s241_s1 + $0x8] sm:$0xff]  ;;  %v19_v2 = vld [vmem:[%s241_s1 + $0x10] sm:$0xff] }
   0x2   :  { %v149_v3 = vpack.c.bf16 %v18_v1, %v17_v0  ;;  %v20_v4 = vld [vmem:[%s241_s1 + $0x18] sm:$0xff]  ;;  %v15_v5 = vld [vmem:[%s240_s0] sm:$0xff] }
   0x3   :  { %v153_v6 = vpack.c.bf16 %v20_v4, %v19_v2  ;;  %146 = vmatprep.mubr.msk.f32.mxu0 %vm28_vm0, %v15_v5 }
   0x4   :  { %8 = vsyncpa [#allocation3], 0  ;;  %150 = vmatprep.subr.bf16.mxu0 %v149_v3  ;;  %v16_v7 = vld [vmem:[%s240_s0 + $0x8] sm:$0xff]  ;;  %v129_v8 = vld [vmem:[%s242_s2] ss:$0 sm:$0xff]  ;;  %s184_s1 = smov [#allocation2]  }
   0x5   :  { %152 = vmatpush3.bf16.msra.mxu0 %v149_v3  ;;  %s118_s26 = sshll.u32 %s184_s1, 4  ;;  %vm110_vm1 = vcmask 80896   ;;  %s119_s26 = int_to_ptr.vmem [resolvable:$true] %s118_s26 }
   0x6   :  { %154 = vmatprep.subr.bf16.mxu0 %v153_v6  ;;  %s160_s27 = scalar_lea.vmem %s119_s26, 256  ;;  %p165_p1 = scmp.lt.s32.totalorder %s119_s26, %s119_s26 }
   0x7   :  { %p161_p0 = scmp.ne.s32.totalorder %s119_s26, %s160_s27  ;;  %p166_p2 = scmp.lt.s32.totalorder %s160_s27, %s160_s27 }
   0x9   :  { %156 = vmatpush3.bf16.msra.mxu0 %v153_v6  ;;  %p167_p3 = por %p166_p2, %p165_p1 }
   0xb   :  { %p168_p4 = pnand %p167_p3, %p161_p0 }
   0xc   :  { %147 = vmatmul.mubr.msk.f32.vlgmr.msra.gmra.mrb[0].mxu0 %vm28_vm0, %v16_v7 }
  0xdf   :  { %v148_v9 = vpop.f32.mrb[0].mxu0 }
  0xe0   :  { %v107_v10 = vadd.f32 %v148_v9, %v129_v8  ;;  %v101_v11 = vpop.f32.mrb[1].mxu0 }
  0xe1   :  { %v102_v12 = vadd.f32 %v129_v8, %v101_v11 }
  0xe2   :  { %112 = vst.msk [vmem:[#allocation2 + $0x8] sm:$0xff] %vm110_vm1, %v107_v10 }
  0xe3   :  { %111 = vst.msk [vmem:[#allocation2] sm:$0xff] %vm110_vm1, %v102_v12 }
  0xe4   :  { %171 = shalt.err (!%p168_p4)
}
  0xe5   :  { %s172_s2 = scalar_lea.hbm %s243_s3, 256 }
  0xe6   :  { %p173_p5 = scmp.ne.s32.totalorder %s243_s3, %s172_s2  ;;  %p176_p6 = scmp.lt.u32.totalorder %s172_s2, %s243_s3 }
  0xe8   :  { %p178_p7 = pnand %p176_p6, %p173_p5 }
  0xea   :  { %181 = shalt.err (!%p178_p7)
}
  0xeb   :  { %s185_s6 = smov 128   ;;  %s186_s7 = smov 8  }
  0xec   :  { %124 = dma.vmem_to_hbm [thread:$0]  %s119_s26, 256, %s243_s3, [#allocation3], %s185_s6, %s185_s6, %s186_s7  }
  0xed   :  { %182 = dma.done.wait [#allocation3], 256  }
  0xee   :  { %183 = vsyncadd [#allocation3], 4294967040 }
  0xef   :  { %128 = vsyncpa [#allocation3], 1 }

</bundles_post_ra>
